<compile_context>
chip_gen: v7x
topology: tpu7x:2x2x1
jax: 0.10.0
libtpu: 0.0.40
codegen_flags: <defaults>
</compile_context>

<pallas_src>
import math
from functools import partial

import jax
import jax.numpy as jnp
import numpy as np
from jax.experimental import pallas as pl
from jax.experimental.pallas import tpu as pltpu


def _round_up(x, m):
    return ((x + m - 1) // m) * m


def _conv_kernel(xm_ref, xh_ref, w_ref, b_ref, o_ref, *, chunks):
    """One (batch, time-tile) grid step.

    xm_ref: (1, R, P*C_in)            packed input rows of this tile
    xh_ref: (1, 8, P*C_in)            next 8 packed rows (halo for the K-1 taps)
    w_ref : ((P+K-1)*C_in, P*C_out)   block-Toeplitz conv weights
    b_ref : (1, P*C_out)              bias tiled over the P packed time steps
    o_ref : (1, R, P*C_out)           lane-dense packed output tile
    """
    xm = xm_ref[0]
    xh = xh_ref[0]
    w = w_ref[...]
    acc = jnp.zeros(o_ref.shape[1:], jnp.float32)
    for q, start, width in chunks:
        if q == 0:
            xq = xm                                   # (R, P*C_in)
        else:
            # rows [q, q+R) of the tile extended by the halo rows.
            xq = jnp.concatenate([xm[q:, :width], xh[:q, :width]], axis=0)
        acc += jnp.dot(xq, w[start:start + width, :],
                       preferred_element_type=jnp.float32)
    o_ref[0] = (acc + b_ref[...]).astype(o_ref.dtype)


def conv_classifier_forward(input_seq, weight, bias, *, time_tile=2048):
    """Pallas forward pass of ConvClassifier.

    Args:
      input_seq: (B, C_in, T) float  -- PyTorch NCW layout.
      weight:    (C_out, C_in, K) float -- PyTorch Conv1d weight layout.
      bias:      (C_out,) float.

    Returns:
      (B, T, C_out) float32, identical to
      torch.nn.Conv1d(C_in, C_out, K, padding=K//2)(input_seq).transpose(1, 2).
    """
    B, C_in, T = input_seq.shape
    C_out, C_in_w, K = weight.shape
    assert C_in_w == C_in
    if K % 2 == 0:
        # Matches the PyTorch module, which rejects even kernel sizes.
        raise NotImplementedError("Kernel size must be an odd number!")
    pad = K // 2

    # ---- packing / tiling parameters --------------------------------------
    P = max(1, 128 // C_out)          # time steps packed per lane-dense row
    PC_in = P * C_in
    PC_out = P * C_out
    contr = (P + K - 1) * C_in        # contraction dim of the packed matmul
    if (K - 1) > 8 * P:
        raise NotImplementedError("kernel_size too large for this packing")

    row_unit = 8 * P                  # time tile must be a multiple of this
    tile_cap = max(row_unit, (time_tile // row_unit) * row_unit)
    TT = min(_round_up(T, row_unit), tile_cap)     # time steps per tile
    num_t = pl.cdiv(T, TT)
    T_out_pad = num_t * TT            # output time steps actually computed
    T_in_pad = T_out_pad + row_unit   # + 8 packed halo rows of zeros
    R = TT // P                       # packed rows per tile (multiple of 8)

    f32 = jnp.float32
    x = input_seq.astype(f32)
    w = weight.astype(f32)
    b = bias.astype(f32)

    # ---- glue: single fused relayout+pad pass over the (smaller) input ----
    x_cl = jnp.transpose(x, (0, 2, 1))                              # (B, T, C_in)
    x_pad = jnp.pad(x_cl, ((0, 0), (pad, T_in_pad - pad - T), (0, 0)))
    x_packed = x_pad.reshape(B, T_in_pad // P, PC_in)               # free reshape

    # ---- block-Toeplitz weight (contr, P*C_out) ----------------------------
    # w_big[di*C_in + ci, dt*C_out + co] = weight[co, ci, di - dt] if 0<=di-dt<K
    w_t = jnp.transpose(w, (2, 1, 0))                               # (K, C_in, C_out)
    dt = np.arange(P)[:, None]
    di = np.arange(P + K - 1)[None, :]
    k_off = di - dt                                                 # (P, P+K-1)
    valid = (k_off >= 0) & (k_off < K)
    w_gather = w_t[np.clip(k_off, 0, K - 1)]                        # (P, P+K-1, C_in, C_out)
    w_big = jnp.where(valid[:, :, None, None], w_gather, 0.0)
    w_big = jnp.transpose(w_big, (1, 2, 0, 3)).reshape(contr, PC_out)
    b_big = jnp.tile(b, P).reshape(1, PC_out)

    # ---- contraction chunks (q = packed-row offset into the halo) ---------
    chunks = []
    for q in range(pl.cdiv(contr, PC_in)):
        start = q * PC_in
        chunks.append((q, start, min(PC_in, contr - start)))
    kernel = partial(_conv_kernel, chunks=tuple(chunks))

    cost = pl.CostEstimate(
        flops=2 * B * T_out_pad * K * C_in * C_out,
        transcendentals=0,
        bytes_accessed=int(x_packed.size * 4 + w_big.size * 4 + b_big.size * 4
                           + B * T_out_pad * C_out * 4),
    )

    out_packed = pl.pallas_call(
        kernel,
        out_shape=jax.ShapeDtypeStruct((B, num_t * R, PC_out), f32),
        grid_spec=pltpu.PrefetchScalarGridSpec(
            num_scalar_prefetch=0,
            grid=(B, num_t),
            in_specs=[
                # current tile: R packed rows
                pl.BlockSpec((1, R, PC_in), lambda bi, ti: (bi, ti, 0)),
                # halo: the next 8 packed rows (exist thanks to right padding)
                pl.BlockSpec((1, 8, PC_in),
                             lambda bi, ti: (bi, (ti + 1) * (R // 8), 0)),
                # weights / bias: resident across the whole grid
                pl.BlockSpec((contr, PC_out), lambda bi, ti: (0, 0)),
                pl.BlockSpec((1, PC_out), lambda bi, ti: (0, 0)),
            ],
            out_specs=pl.BlockSpec((1, R, PC_out), lambda bi, ti: (bi, ti, 0)),
        ),
        compiler_params=pltpu.CompilerParams(
            dimension_semantics=("parallel", "parallel")),
        cost_estimate=cost,
    )(x_packed, x_packed, w_big, b_big)

    # Free reshape back to time-major; slice off the alignment padding.
    out = out_packed.reshape(B, T_out_pad, C_out)
    return out[:, :T, :]


def _reference_forward(input_seq, weight, bias):
    """Pure-JAX reference matching torch.nn.Conv1d + transpose(1, 2)."""
    K = weight.shape[-1]
    out = jax.lax.conv_general_dilated(
        input_seq, weight,
        window_strides=(1,),
        padding=[(K // 2, K // 2)],
        dimension_numbers=("NCH", "OIH", "NCH"),
    )
    out = out + bias[None, :, None]
    return jnp.transpose(out, (0, 2, 1))


if __name__ == "__main__":
    # Shapes consistent with ConvClassifier(input_dim=4, out_set_size=8, kernel_size=3)
    B, C_in, T = 2, 4, 16
    C_out, K = 8, 3

    key = jax.random.PRNGKey(0)
    kx, kw, kb = jax.random.split(key, 3)

    # Deterministic parameter init (PyTorch Conv1d-style uniform bound).
    bound = 1.0 / math.sqrt(C_in * K)
    weight = jax.random.uniform(kw, (C_out, C_in, K), jnp.float32,
                                minval=-bound, maxval=bound)
    bias = jax.random.uniform(kb, (C_out,), jnp.float32,
                              minval=-bound, maxval=bound)
    input_seq = jax.random.normal(kx, (B, C_in, T), jnp.float32)

    fwd = jax.jit(conv_classifier_forward)
    out = fwd(input_seq, weight, bias)
    out = jax.block_until_ready(out)

    ref = _reference_forward(input_seq, weight, bias)
    assert out.shape == (B, T, C_out), out.shape
    assert jnp.allclose(out, ref, atol=1e-5, rtol=1e-5), "mismatch vs reference"

    print("KERNEL_OK")
</pallas_src>

<mosaic_0001>
module attributes {stable_mosaic.version = 11 : i64} {
  func.func @_conv_kernel(%arg0: i32, %arg1: i32, %arg2: memref<1x8x64xf32, #tpu.memory_space<vmem>>, %arg3: memref<1x8x64xf32, #tpu.memory_space<vmem>>, %arg4: memref<72x128xf32, #tpu.memory_space<vmem>>, %arg5: memref<1x128xf32, #tpu.memory_space<vmem>>, %arg6: memref<1x8x128xf32, #tpu.memory_space<vmem>>) attributes {dimension_semantics = [#tpu.dimension_semantics<parallel>, #tpu.dimension_semantics<parallel>], iteration_bounds = array<i64: 2, 1>, scalar_prefetch = 0 : i64, scratch_operands = 0 : i64, tpu.core_type = #tpu.core_type<tc>, window_params = [{transform_indices = @transform_0, window_bounds = array<i64: 1, 8, 64>}, {transform_indices = @transform_1, window_bounds = array<i64: 1, 8, 64>}, {pipeline_mode = #tpu.pipeline_mode<synchronous>, transform_indices = @transform_2, window_bounds = array<i64: 72, 128>}, {pipeline_mode = #tpu.pipeline_mode<synchronous>, transform_indices = @transform_3, window_bounds = array<i64: 1, 128>}, {transform_indices = @transform_4, window_bounds = array<i64: 1, 8, 128>}]} {
    %c0 = arith.constant 0 : index
    %c0_0 = arith.constant 0 : index
    %c0_1 = arith.constant 0 : index
    %0 = vector.load %arg2[%c0, %c0_0, %c0_1] : memref<1x8x64xf32, #tpu.memory_space<vmem>>, vector<1x8x64xf32>
    %1 = vector.shape_cast %0 : vector<1x8x64xf32> to vector<8x64xf32>
    %c0_2 = arith.constant 0 : index
    %c0_3 = arith.constant 0 : index
    %c0_4 = arith.constant 0 : index
    %2 = vector.load %arg3[%c0_2, %c0_3, %c0_4] : memref<1x8x64xf32, #tpu.memory_space<vmem>>, vector<1x8x64xf32>
    %3 = vector.shape_cast %2 : vector<1x8x64xf32> to vector<8x64xf32>
    %c0_5 = arith.constant 0 : index
    %c0_6 = arith.constant 0 : index
    %4 = vector.load %arg4[%c0_5, %c0_6] : memref<72x128xf32, #tpu.memory_space<vmem>>, vector<72x128xf32>
    %cst = arith.constant 0.000000e+00 : f32
    %5 = vector.broadcast %cst : f32 to vector<8x128xf32>
    %6 = vector.extract_strided_slice %4 {offsets = [0, 0], sizes = [64, 128], strides = [1, 1]} : vector<72x128xf32> to vector<64x128xf32>
    %cst_7 = arith.constant dense<0.000000e+00> : vector<8x128xf32>
    %7 = tpu.matmul %1, %6, %cst_7 {dimension_numbers = #tpu.dot_dimension_numbers<[1], [0], [0], [1], [0, 0, 1, 1], [], []>} : vector<8x64xf32>, vector<64x128xf32>, vector<8x128xf32> -> vector<8x128xf32>
    %8 = arith.addf %5, %7 : vector<8x128xf32>
    %9 = vector.extract_strided_slice %1 {offsets = [1, 0], sizes = [7, 8], strides = [1, 1]} : vector<8x64xf32> to vector<7x8xf32>
    %10 = vector.extract_strided_slice %3 {offsets = [0, 0], sizes = [1, 8], strides = [1, 1]} : vector<8x64xf32> to vector<1x8xf32>
    %11 = tpu.concatenate %9, %10 in 0 : vector<7x8xf32>, vector<1x8xf32> -> vector<8x8xf32>
    %12 = vector.extract_strided_slice %4 {offsets = [64, 0], sizes = [8, 128], strides = [1, 1]} : vector<72x128xf32> to vector<8x128xf32>
    %cst_8 = arith.constant dense<0.000000e+00> : vector<8x128xf32>
    %13 = tpu.matmul %11, %12, %cst_8 {dimension_numbers = #tpu.dot_dimension_numbers<[1], [0], [0], [1], [0, 0, 1, 1], [], []>} : vector<8x8xf32>, vector<8x128xf32>, vector<8x128xf32> -> vector<8x128xf32>
    %14 = arith.addf %8, %13 : vector<8x128xf32>
    %c0_9 = arith.constant 0 : index
    %c0_10 = arith.constant 0 : index
    %15 = vector.load %arg5[%c0_9, %c0_10] : memref<1x128xf32, #tpu.memory_space<vmem>>, vector<1x128xf32>
    %16 = vector.broadcast %15 : vector<1x128xf32> to vector<8x128xf32>
    %17 = arith.addf %14, %16 : vector<8x128xf32>
    %c0_11 = arith.constant 0 : index
    %c0_12 = arith.constant 0 : index
    %c0_13 = arith.constant 0 : index
    %18 = vector.load %arg6[%c0_11, %c0_12, %c0_13] : memref<1x8x128xf32, #tpu.memory_space<vmem>>, vector<1x8x128xf32>
    %19 = vector.shape_cast %18 : vector<1x8x128xf32> to vector<8x128xf32>
    %20 = vector.shape_cast %17 : vector<8x128xf32> to vector<1x8x128xf32>
    tpu.vector_store %arg6[%c0_11, %c0_12, %c0_13], %20 {strides = array<i32>} : memref<1x8x128xf32, #tpu.memory_space<vmem>>, vector<1x8x128xf32>,
    return
  }
  func.func @transform_0(%arg0: i32, %arg1: i32) -> (i32, i32, i32) {
    %c0_i32 = arith.constant 0 : i32
    %c0_i32_0 = arith.constant 0 : i32
    return %arg0, %arg1, %c0_i32 : i32, i32, i32
  }
  func.func @transform_1(%arg0: i32, %arg1: i32) -> (i32, i32, i32) {
    %c1_i32 = arith.constant 1 : i32
    %0 = arith.addi %arg1, %c1_i32 : i32
    %c1_i32_0 = arith.constant 1 : i32
    %1 = arith.muli %0, %c1_i32_0 : i32
    %c0_i32 = arith.constant 0 : i32
    %c0_i32_1 = arith.constant 0 : i32
    return %arg0, %1, %c0_i32 : i32, i32, i32
  }
  func.func @transform_2(%arg0: i32, %arg1: i32) -> (i32, i32) {
    %c0_i32 = arith.constant 0 : i32
    %c0_i32_0 = arith.constant 0 : i32
    %c0_i32_1 = arith.constant 0 : i32
    return %c0_i32, %c0_i32_0 : i32, i32
  }
  func.func @transform_3(%arg0: i32, %arg1: i32) -> (i32, i32) {
    %c0_i32 = arith.constant 0 : i32
    %c0_i32_0 = arith.constant 0 : i32
    %c0_i32_1 = arith.constant 0 : i32
    return %c0_i32, %c0_i32_0 : i32, i32
  }
  func.func @transform_4(%arg0: i32, %arg1: i32) -> (i32, i32, i32) {
    %c0_i32 = arith.constant 0 : i32
    %c0_i32_0 = arith.constant 0 : i32
    return %arg0, %arg1, %c0_i32 : i32, i32, i32
  }
}

</mosaic_0001>

<bundles_post_ra>
// kernel: tile.8
= control target key start
LH: loop header
LB: loop body
LE: loop exit
PB: predicated region body
PF: predicated region fallthrough
CT: control target
= control target key end

     0   :  { %s28_s0 = inlined_call_operand.vmem [shape: f32[8], index: 0, kind: input, shape index: {}]   ;;  %s29_s1 = inlined_call_operand.vmem [shape: f32[16,8], index: 1, kind: output, shape index: {}]  }
   0x1   :  { %v4_v0 = vld [vmem:[%s28_s0] ss:$0 sm:$0xff] }
   0x2   :  { %5 = vst [vmem:[%s29_s1] sm:$0xff] %v4_v0  ;;  %8 = vst [vmem:[%s29_s1 + $0x8] sm:$0xff] %v4_v0 }

// kernel: tile.9
= control target key start
LH: loop header
LB: loop body
LE: loop exit
PB: predicated region body
PF: predicated region fallthrough
CT: control target
= control target key end

     0   :  { %s131_s10 = smov 120   ;;  %s132_s11 = smov 104   ;;  %vm3_vm0 = vcmask 64512   ;;  %vm9_vm1 = vcmask 1048512   ;;  %vm15_vm2 = vcmask 982912   ;;  %vm21_vm3 = vcmask 917312   ;;  %s207_s0 = inlined_call_operand.vmem [shape: f32[16,8], index: 0, kind: input, shape index: {}]   ;;  %s208_s1 = inlined_call_operand.vmem [shape: f32[1,128], index: 1, kind: output, shape index: {}]  }
   0x1   :  { %v101_v0 = vld [vmem:[%s207_s0 + $0xf] sm:$0x1]   ;;  %v103_v1 = vld [vmem:[%s207_s0 + $0xd] sm:$0x1]   ;;  %v102_v2 = vld [vmem:[%s207_s0 + $0xe] sm:$0x1]  }
   0x2   :  { %7 = vrot.lane.b32.xlu0 %v101_v0, %s131_s10  ;;  %19 = vrot.lane.b32.xlu1 %v103_v1, %s132_s11  ;;  %v104_v3 = vld [vmem:[%s207_s0 + $0xc] sm:$0x1]   ;;  %s133_s16 = smov 112   ;;  %s134_s17 = smov 96   ;;  %v105_v4 = vld [vmem:[%s207_s0 + $0xb] sm:$0x1]  }
   0x3   :  { %v106_v5 = vld [vmem:[%s207_s0 + $0xa] sm:$0x1]   ;;  %v2_v6 = vld [vmem:[%s207_s0] sm:$0x1]   ;;  %s135_s24 = smov 88   ;;  %s136_s25 = smov 80  }
   0x4   :  { %4 = vst.msk [vmem:[#allocation0] sm:$0x1] %vm3_vm0, %v2_v6   ;;  %v107_v7 = vld [vmem:[%s207_s0 + $0x9] sm:$0x1]   ;;  %v108_v8 = vld [vmem:[%s207_s0 + $0x8] sm:$0x1]  }
   0x5   :  { %s137_s30 = smov 72   ;;  %s138_s2 = smov 64   ;;  %v109_v9 = vld [vmem:[%s207_s0 + $0x7] sm:$0x1]   ;;  %v110_v10 = vld [vmem:[%s207_s0 + $0x6] sm:$0x1]  }
   0x6   :  { %13 = vrot.lane.b32.xlu0 %v102_v2, %s133_s16  ;;  %25 = vrot.lane.b32.xlu1 %v104_v3, %s134_s17  ;;  %s139_s7 = smov 56   ;;  %s140_s8 = smov 48   ;;  %v111_v11 = vld [vmem:[%s207_s0 + $0x5] sm:$0x1]   ;;  %v112_v12 = vld [vmem:[%s207_s0 + $0x4] sm:$0x1]  }
   0x7   :  { %s141_s13 = smov 40   ;;  %s142_s14 = smov 32   ;;  %v113_v13 = vld [vmem:[%s207_s0 + $0x3] sm:$0x1]   ;;  %v114_v14 = vld [vmem:[%s207_s0 + $0x2] sm:$0x1]  }
   0x8   :  { %s143_s19 = smov 24   ;;  %s144_s20 = smov 16   ;;  %v115_v15 = vld [vmem:[%s207_s0 + $0x1] sm:$0x1]   ;;  %vm27_vm4 = vcmask 851712   ;;  %vm33_vm5 = vcmask 786112  }
   0x9   :  { %s145_s0 = smov 8   ;;  %vm39_vm6 = vcmask 720512   ;;  %vm45_vm7 = vcmask 654912   ;;  %vm51_vm8 = vcmask 589312   ;;  %vm57_vm9 = vcmask 523712  }
   0xa   :  { %31 = vrot.lane.b32.xlu0 %v105_v4, %s135_s24  ;;  %37 = vrot.lane.b32.xlu1 %v106_v5, %s136_s25  ;;  %vm63_vm10 = vcmask 458112   ;;  %vm69_vm11 = vcmask 392512   ;;  %vm75_vm12 = vcmask 326912   ;;  %vm81_vm13 = vcmask 261312  }
   0xb   :  { %vm87_vm14 = vcmask 195712   ;;  %vm93_vm15 = vcmask 130112  }
   0xe   :  { %43 = vrot.lane.b32.xlu0 %v107_v7, %s137_s30  ;;  %49 = vrot.lane.b32.xlu1 %v108_v8, %s138_s2 }
  0x12   :  { %55 = vrot.lane.b32.xlu0 %v109_v9, %s139_s7  ;;  %61 = vrot.lane.b32.xlu1 %v110_v10, %s140_s8 }
  0x16   :  { %67 = vrot.lane.b32.xlu0 %v111_v11, %s141_s13  ;;  %73 = vrot.lane.b32.xlu1 %v112_v12, %s142_s14 }
  0x1a   :  { %79 = vrot.lane.b32.xlu0 %v113_v13, %s143_s19  ;;  %85 = vrot.lane.b32.xlu1 %v114_v14, %s144_s20 }
  0x1e   :  { %91 = vrot.lane.b32.xlu0 %v115_v15, %s145_s0 }
  0x74   :  { %v8_v16 = vpop.permute.xlu0 %7   ;;  %v20_v17 = vpop.permute.xlu1 %19  }
  0x75   :  { %10 = vst.msk [vmem:[#allocation0] sm:$0x1] %vm9_vm1, %v8_v16  }
  0x78   :  { %v14_v18 = vpop.permute.xlu0 %13   ;;  %v26_v19 = vpop.permute.xlu1 %25  }
  0x79   :  { %16 = vst.msk [vmem:[#allocation0] sm:$0x1] %vm15_vm2, %v14_v18  }
  0x7a   :  { %22 = vst.msk [vmem:[#allocation0] sm:$0x1] %vm21_vm3, %v20_v17  }
  0x7b   :  { %28 = vst.msk [vmem:[#allocation0] sm:$0x1] %vm27_vm4, %v26_v19  }
  0x7c   :  { %v32_v20 = vpop.permute.xlu0 %31   ;;  %v38_v21 = vpop.permute.xlu1 %37  }
  0x7d   :  { %34 = vst.msk [vmem:[#allocation0] sm:$0x1] %vm33_vm5, %v32_v20  }
  0x7e   :  { %40 = vst.msk [vmem:[#allocation0] sm:$0x1] %vm39_vm6, %v38_v21  }
  0x80   :  { %v44_v22 = vpop.permute.xlu0 %43   ;;  %v50_v23 = vpop.permute.xlu1 %49  }
  0x81   :  { %46 = vst.msk [vmem:[#allocation0] sm:$0x1] %vm45_vm7, %v44_v22  }
  0x82   :  { %52 = vst.msk [vmem:[#allocation0] sm:$0x1] %vm51_vm8, %v50_v23  }
  0x84   :  { %v56_v24 = vpop.permute.xlu0 %55   ;;  %v62_v25 = vpop.permute.xlu1 %61  }
  0x85   :  { %58 = vst.msk [vmem:[#allocation0] sm:$0x1] %vm57_vm9, %v56_v24  }
  0x86   :  { %64 = vst.msk [vmem:[#allocation0] sm:$0x1] %vm63_vm10, %v62_v25  }
  0x88   :  { %v68_v26 = vpop.permute.xlu0 %67   ;;  %v74_v27 = vpop.permute.xlu1 %73  }
  0x89   :  { %70 = vst.msk [vmem:[#allocation0] sm:$0x1] %vm69_vm11, %v68_v26  }
  0x8a   :  { %76 = vst.msk [vmem:[#allocation0] sm:$0x1] %vm75_vm12, %v74_v27  }
  0x8c   :  { %v80_v28 = vpop.permute.xlu0 %79   ;;  %v86_v29 = vpop.permute.xlu1 %85  }
  0x8d   :  { %82 = vst.msk [vmem:[#allocation0] sm:$0x1] %vm81_vm13, %v80_v28  }
  0x8e   :  { %88 = vst.msk [vmem:[#allocation0] sm:$0x1] %vm87_vm14, %v86_v29  }
  0x90   :  { %v92_v30 = vpop.permute.xlu0 %91  }
  0x91   :  { %94 = vst.msk [vmem:[#allocation0] sm:$0x1] %vm93_vm15, %v92_v30  }
  0x98   :  { %v98_v31 = vld [vmem:[#allocation0] sm:$0x1] }
  0x99   :  { %100 = vst [vmem:[%s208_s1] sm:$0x1] %v98_v31 }

// kernel: conv_classifier_forward.1
= control target key start
LH: loop header
LB: loop body
LE: loop exit
PB: predicated region body
PF: predicated region fallthrough
CT: control target
= control target key end

     0   :  { %s680_s15 = smov 0   ;;  %s682_s16 = smov 0   ;;  %s750_s0 = inlined_call_operand.vmem [shape: f32[2,16,64], index: 0, kind: input, shape index: {}, may-alias: {0,1}]   ;;  %s751_s1 = inlined_call_operand.vmem [shape: f32[2,16,64], index: 1, kind: input, shape index: {}, may-alias: {0,1}]   ;;  %s752_s2 = inlined_call_operand.vmem [shape: f32[72,128], index: 2, kind: input, shape index: {}]   ;;  %s753_s3 = inlined_call_operand.vmem [shape: f32[1,128], index: 3, kind: input, shape index: {}]   ;;  %s754_s4 = inlined_call_operand.vmem [shape: f32[2,8,128], index: 4, kind: output, shape index: {}]  }
   0x1   :  { %s684_s17 = smov 0  }
   0x2 LB: > { %s26_s18 = sadd.s32 1, %s646_s16  ;;  %p539_p0 = scmp.ge.s32.totalorder %s650_s17, 1  ;;  %s650_s17 = sphi %s684_s17, %s14_s17   ;;  %s646_s16 = sphi %s682_s16, %s756_s16   ;;  %s642_s15 = sphi %s680_s15, %s755_s15  }
   0x3   : > { %p28_p1 = scmp.ge.s32.totalorder %s26_s18, 2  ;;  %p200_p2 = scmp.lt.s32.totalorder %s650_s17, 3 }
   0x5   : > { %s758_s18 = smov (%p28_p1, %s26_s18), 0  ;;  %p201_p3 = pnand %p539_p0, %p200_p2 }
   0x6   : > { %v267_v0 = vld [vmem:[%s752_s2] sm:$0xff] (!%p201_p3)  ;;  %v268_v1 = vld [vmem:[%s752_s2 + $0x8] sm:$0xff] (!%p201_p3)  ;;  %v269_v2 = vld [vmem:[%s752_s2 + $0x10] sm:$0xff] (!%p201_p3)  ;;  %v652_v3 = vmov (!%p201_p3), 0.0|0.0   ;;  %v653_v6 = vmov (!%p201_p3), 0.0   ;;  %p240_p4 = scmp.lt.s32.totalorder (!%p201_p3), %s642_s15, 1 }
   0x7   : > { %204 = sbr.rel (%p201_p3) target bundleno = 241 (0xf1), region = 36  ;;  %589 = vmatprep.subr.bf16.mxu1 (!%p201_p3), %v652_v3  ;;  %v590_v4 = vpack.c.bf16 (!%p201_p3), %v268_v1, %v267_v0  ;;  %v270_v5 = vld [vmem:[%s752_s2 + $0x18] sm:$0xff] (!%p201_p3)  ;;  %565 = vmatprep.subr.mxu0 (!%p201_p3), %v653_v6  ;;  %v275_v7 = vld [vmem:[%s752_s2 + $0x40] sm:$0xff] (!%p201_p3)  ;;  %vm654_vm0 = vmmov (!%p201_p3), 0   ;;  %v272_v10 = vld [vmem:[%s752_s2 + $0x28] sm:$0xff] (!%p201_p3)  ;;  %vm282_vm1 = vcmask (!%p201_p3), 1046528  }
   0x8   : > { %567 = vmatprep.mubr.msk.f32.mxu0 (!%p201_p3), %vm654_vm0, %v653_v6  ;;  %586 = vmatprep.mubr.msk.f32.mxu1 (!%p201_p3), %vm654_vm0, %v653_v6  ;;  %v593_v8 = vpack.c.bf16 (!%p201_p3), %v270_v5, %v269_v2  ;;  %v271_v9 = vld [vmem:[%s752_s2 + $0x20] sm:$0xff] (!%p201_p3)  ;;  %v273_v13 = vld [vmem:[%s752_s2 + $0x30] sm:$0xff] (!%p201_p3)  ;;  %v274_v14 = vld [vmem:[%s752_s2 + $0x38] sm:$0xff] (!%p201_p3)  ;;  %vm284_vm2 = vcmask (!%p201_p3), 64512   ;;  %vm358_vm3 = vcmask (!%p201_p3), 523264  }
   0x9   : > { %591 = vmatpush3.bf16.msra.mxu1 (!%p201_p3), %v590_v4  ;;  %566 = vmatpush3.msra.mxu0 (!%p201_p3), %v275_v7  ;;  %v596_v11 = vpack.c.bf16 (!%p201_p3), %v272_v10, %v271_v9  ;;  %v599_v18 = vpack.c.bf16 (!%p201_p3), %v274_v14, %v273_v13  ;;  %v547_v23 = vld [vmem:[%s753_s3] ss:$0 sm:$0xff] (!%p201_p3) }
   0xa   : > { %592 = vmatprep.subr.bf16.mxu1 (!%p201_p3), %v652_v3 }
   0xd   : > { %594 = vmatpush3.bf16.msra.mxu1 (!%p201_p3), %v593_v8 }
   0xe   : > { %s760_s15 = smov (!%p240_p4, %s642_s15), 1  ;;  %595 = vmatprep.subr.bf16.mxu1 %v652_v3 }
   0xf   : > { %s550_s7 = sshll.u32 %s760_s15, 4  ;;  %s544_s23 = sshll.u32 %s760_s15, 3 }
  0x10   : > { %s247_s10 = scalar_lea.vmem %s750_s0, %s550_s7  ;;  %s552_s11 = sadd.s32 8, %s550_s7 }
  0x11   : > { %s256_s14 = scalar_lea.vmem %s751_s1, %s552_s11  ;;  %v265_v12 = vld [vmem:[%s247_s10] sm:$0xff]  ;;  %597 = vmatpush3.bf16.msra.mxu1 %v596_v11  ;;  %s264_s28 = scalar_lea.vmem %s754_s4, %s544_s23 }
  0x12   : > { %v266_v15 = vld [vmem:[%s256_s14] sm:$0xff]  ;;  %v277_v16 = vrot.slane %v265_v12, 1  ;;  %598 = vmatprep.subr.bf16.mxu1 %v652_v3 }
  0x13   : > { %v280_v17 = vrot.slane %v266_v15, 1 }
  0x15   : > { %v283_v19 = vsel %vm282_vm1, %v277_v16, %v280_v17  ;;  %600 = vmatpush3.bf16.msra.mxu1 %v599_v18 }
  0x16   : > { %568 = vmatmul.mubr.msk.f32.vlgmr.msra.gmra.mrb[0].mxu0 %vm284_vm2, %v283_v19 }
  0x18   : > { %587 = vmatmul.mubr.msk.f32.vlgmr.msra.gmra.mrb[0].mxu1 %vm358_vm3, %v265_v12 }
  0xe9   : > { %v354_v20 = vpop.f32.mrb[0].mxu0 }
  0xea   : > { %v569_v21 = vpop.f32.mrb[1].mxu0 }
  0xeb   : > { %v427_v22 = vpop.f32.mrb[0].mxu1 }
  0xec   : > { %v428_v24 = vadd.f32 %v427_v22, %v354_v20  ;;  %v588_v25 = vpop.f32.mrb[1].mxu1 }
  0xee   : > { %v438_v26 = vadd.f32 %v547_v23, %v428_v24 }
  0xf0   : > { %439 = vst [vmem:[%s264_s28] sm:$0xff] %v438_v26 }
  0xf1 PF: > { %s14_s17 = sadd.s32 1, %s650_s17   ;;  %s755_s15 = smov %s646_s16 }
  0xf2   : > { %p11_p5 = scmp.ge.s32.totalorder %s14_s17, 4   ;;  %s756_s16 = smov %s758_s18 }
  0xf4   :  { %13 = sbr.rel (!%p11_p5) target bundleno = 2 (0x2), region = 69 }

</bundles_post_ra>
